<compile_context>
chip_gen: v5e
topology: v5e:2x2
jax: 0.10.0
libtpu: 0.0.40
codegen_flags: <defaults>
</compile_context>

<pallas_src>
import functools
import math

import jax
import jax.numpy as jnp
from jax import lax
from jax.experimental import pallas as pl
from jax.experimental.pallas import tpu as pltpu


def _round_up(x, m):
    return ((x + m - 1) // m) * m


# --------------------------------------------------------------------------- #
# Pass 1: feature pre-projection  projT = W @ feats.T, plus a ones "count" row #
# --------------------------------------------------------------------------- #
def _project_kernel(w_ref, feats_ref, out_ref, *, cnt_row):
    """w_ref: [E_rows, D]  bf16 (rows >= E are zero)
       feats_ref: [tn, D]  bf16
       out_ref: [E_rows, tn] bf16 = W @ feats_tile.T, with row `cnt_row` == 1.0
    """
    proj = lax.dot_general(
        w_ref[...], feats_ref[...],
        dimension_numbers=(((1,), (1,)), ((), ())),
        preferred_element_type=jnp.float32,
    )                                                         # [E_rows, tn]
    rows = lax.broadcasted_iota(jnp.int32, proj.shape, 0)
    # Row `cnt_row` carries ones so the aggregation matmul also produces the
    # per-node neighbor count (mask columns are zero in padded regions).
    out_ref[...] = jnp.where(rows == cnt_row, 1.0, proj).astype(out_ref.dtype)


# --------------------------------------------------------------------------- #
# Pass 2: fused mean aggregation (mask matmul) + 1/deg scaling + ReLU          #
# --------------------------------------------------------------------------- #
def _aggregate_kernel(mask_ref, projT_ref, out_ref, acc_ref, *, cnt_row):
    """mask_ref : [tB, tN]      int8 0/1 adjacency tile
       projT_ref: [E_rows, tN]  bf16 projected features (+ count row)
       out_ref  : [E_rows, tB]  f32  relu((W @ mean_neigh.T)) for this batch tile
       acc_ref  : [E_rows, tB]  f32 scratch (running sums; row cnt_row = counts)
    """
    n = pl.program_id(1)

    @pl.when(n == 0)
    def _():
        acc_ref[...] = jnp.zeros_like(acc_ref)

    # int8 -> bf16 upcast is cheap VALU filler hidden under the mask-tile DMA.
    mask = mask_ref[...].astype(jnp.bfloat16)                 # [tB, tN]
    acc_ref[...] += lax.dot_general(
        projT_ref[...], mask,
        dimension_numbers=(((1,), (1,)), ((), ())),
        preferred_element_type=jnp.float32,
    )                                                         # [E_rows, tB]

    @pl.when(n == pl.num_programs(1) - 1)
    def _():
        acc = acc_ref[...]
        # Exact integer neighbor counts produced by the ones row of projT.
        cnt = acc[cnt_row:cnt_row + 1, :]                     # [1, tB]
        # Exact f32 division (matches torch's sum/num); zero-degree rows are
        # clamped to 1 and therefore return 0 instead of torch's NaN.
        out_ref[...] = jnp.maximum(acc / jnp.maximum(cnt, 1.0), 0.0).astype(out_ref.dtype)


def encoder_forward(adj_mask, node_features, weight, *, tile_b=512, tile_n=4096):
    """adj_mask: [B, N] 0/1 (any dtype; stored as int8), node_features: [N, D],
       weight: [E, D]  ->  [E, B] f32 = relu(W @ mean_neigh_feats.T)."""
    B, N = adj_mask.shape
    N_f, D = node_features.shape
    E, D_w = weight.shape
    assert N_f == N and D_w == D

    # ---- tiling (last two block dims must be (8,128)-friendly; tb lane-dense) ----
    B128 = _round_up(B, 128)
    tb = min(tile_b, B128)
    # v7x megacore: prefer >= 2 batch tiles when the batch is big enough.
    if B128 > 128 and tb >= B128:
        tb = max(128, _round_up(B128 // 2, 128))
    tn = min(tile_n, _round_up(N, 128))

    B_pad = _round_up(B, tb)
    N_pad = _round_up(N, tn)
    D_pad = _round_up(D, 128)
    E_rows = _round_up(E + 1, 16)      # +1 for the count row; 16-aligned for bf16
    cnt_row = E

    # ---- compact padded operands (cast first, then a single fused pad) ----
    mask_i8 = adj_mask if adj_mask.dtype == jnp.int8 else adj_mask.astype(jnp.int8)
    mask_p = jnp.pad(mask_i8, ((0, B_pad - B), (0, N_pad - N)))
    feats_p = jnp.pad(node_features.astype(jnp.bfloat16),
                      ((0, N_pad - N), (0, D_pad - D)))
    w_p = jnp.pad(weight.astype(jnp.bfloat16),
                  ((0, E_rows - E), (0, D_pad - D)))

    # ------------------------- pass 1: projection ------------------------- #
    tn_proj = 512 if tn % 512 == 0 else tn        # smaller N tile keeps feats DMA modest
    projT = pl.pallas_call(
        functools.partial(_project_kernel, cnt_row=cnt_row),
        out_shape=jax.ShapeDtypeStruct((E_rows, N_pad), jnp.bfloat16),
        grid_spec=pltpu.PrefetchScalarGridSpec(
            num_scalar_prefetch=0,
            grid=(N_pad // tn_proj,),
            in_specs=[
                pl.BlockSpec((E_rows, D_pad), lambda i: (0, 0)),      # W (resident)
                pl.BlockSpec((tn_proj, D_pad), lambda i: (i, 0)),     # feats tile
            ],
            out_specs=pl.BlockSpec((E_rows, tn_proj), lambda i: (0, i)),
        ),
        compiler_params=pltpu.CompilerParams(
            dimension_semantics=("parallel",),
            vmem_limit_bytes=32 * 1024 * 1024,
        ),
    )(w_p, feats_p)

    # ------------------------- pass 2: aggregation ------------------------ #
    grid = (B_pad // tb, N_pad // tn)
    cost = pl.CostEstimate(
        flops=2 * E_rows * N_pad * B_pad,
        transcendentals=0,
        bytes_accessed=(B_pad * N_pad * 1                    # int8 mask (dominant)
                        + E_rows * N_pad * 2 * grid[0]       # projT re-stream per batch tile
                        + E_rows * B_pad * 4),
    )

    out = pl.pallas_call(
        functools.partial(_aggregate_kernel, cnt_row=cnt_row),
        out_shape=jax.ShapeDtypeStruct((E_rows, B_pad), jnp.float32),
        grid_spec=pltpu.PrefetchScalarGridSpec(
            num_scalar_prefetch=0,
            grid=grid,
            in_specs=[
                pl.BlockSpec((tb, tn), lambda i, n: (i, n)),          # int8 mask tile
                pl.BlockSpec((E_rows, tn), lambda i, n: (0, n)),      # projT tile
            ],
            out_specs=pl.BlockSpec((E_rows, tb), lambda i, n: (0, i)),  # lane-dense
            scratch_shapes=[
                pltpu.VMEM((E_rows, tb), jnp.float32),                # sum + count acc
            ],
        ),
        compiler_params=pltpu.CompilerParams(
            dimension_semantics=("parallel", "arbitrary"),
            vmem_limit_bytes=32 * 1024 * 1024,
        ),
        cost_estimate=cost,
    )(mask_p, projT)

    return out[:E, :B]


def xavier_uniform(key, shape):
    """torch.nn.init.xavier_uniform_ for a 2-D [fan_out, fan_in] weight."""
    fan_out, fan_in = shape
    bound = math.sqrt(6.0 / (fan_in + fan_out))
    return jax.random.uniform(key, shape, dtype=jnp.float32, minval=-bound, maxval=bound)


def reference_forward_kernel_math(adj_mask, node_features, weight):
    """Pure-JAX reference mirroring the kernel math (bf16 projected feats,
    f32 MXU accumulation, exact division, relu)."""
    f = node_features.astype(jnp.bfloat16)
    w = weight.astype(jnp.bfloat16)
    projT = lax.dot_general(w, f, dimension_numbers=(((1,), (1,)), ((), ())),
                            preferred_element_type=jnp.float32).astype(jnp.bfloat16)   # [E, N]
    m = adj_mask.astype(jnp.bfloat16)
    acc = lax.dot_general(projT, m, dimension_numbers=(((1,), (1,)), ((), ())),
                          preferred_element_type=jnp.float32)                          # [E, B]
    cnt = jnp.maximum(adj_mask.sum(axis=-1), 1.0)                                      # [B]
    return jnp.maximum(acc / cnt[None, :], 0.0)


def reference_forward_f32(adj_mask, node_features, weight):
    """Torch-semantics f32 reference: mean first, then W matmul, then relu."""
    cnt = jnp.maximum(adj_mask.sum(axis=-1, keepdims=True), 1.0)
    neigh = (adj_mask @ node_features) / cnt                                           # [B, D]
    return jnp.maximum(weight @ neigh.T, 0.0)                                          # [E, B]


if __name__ == "__main__":
    # Small deterministic problem consistent with the module's __init__:
    #   feature_dim = 128, embed_dim = 32, gcn = False  -> weight: [32, 128]
    N = 64          # total nodes in the graph
    D = 128         # feature_dim
    E = 32          # embed_dim
    B = 16          # batch of nodes passed to forward()

    key = jax.random.PRNGKey(0)
    k_feat, k_w, k_adj = jax.random.split(key, 3)

    node_features = jax.random.normal(k_feat, (N, D), dtype=jnp.float32)
    weight = xavier_uniform(k_w, (E, D))

    # Dense 0/1 adjacency rows for the B batch nodes (>= 1 neighbor each, as the
    # mean aggregator over adj_lists would produce). Stored compactly as int8.
    adj = (jax.random.uniform(k_adj, (B, N)) < 0.2)
    adj = adj.at[:, 0].set(True)
    adj_mask_i8 = adj.astype(jnp.int8)
    adj_mask_f32 = adj.astype(jnp.float32)

    out = encoder_forward(adj_mask_i8, node_features, weight)
    jax.block_until_ready(out)
    assert out.shape == (E, B), out.shape

    ref_k = reference_forward_kernel_math(adj_mask_f32, node_features, weight)
    ref_f = reference_forward_f32(adj_mask_f32, node_features, weight)
    err_k = float(jnp.max(jnp.abs(out - ref_k)))
    err_f = float(jnp.max(jnp.abs(out - ref_f)))
    assert jnp.allclose(out, ref_k, atol=2e-3, rtol=2e-3), err_k
    assert jnp.allclose(out, ref_f, atol=3e-2, rtol=3e-2), err_f

    print("KERNEL_OK")
</pallas_src>

<mosaic_0001>
module attributes {stable_mosaic.version = 11 : i64} {
  func.func @_project_kernel(%arg0: i32, %arg1: memref<48x128xbf16, #tpu.memory_space<vmem>>, %arg2: memref<128x128xbf16, #tpu.memory_space<vmem>>, %arg3: memref<48x128xbf16, #tpu.memory_space<vmem>>) attributes {dimension_semantics = [#tpu.dimension_semantics<parallel>], iteration_bounds = array<i64: 1>, scalar_prefetch = 0 : i64, scratch_operands = 0 : i64, tpu.core_type = #tpu.core_type<tc>, window_params = [{pipeline_mode = #tpu.pipeline_mode<synchronous>, transform_indices = @transform_0, window_bounds = array<i64: 48, 128>}, {transform_indices = @transform_1, window_bounds = array<i64: 128, 128>}, {transform_indices = @transform_2, window_bounds = array<i64: 48, 128>}]} {
    %c0 = arith.constant 0 : index
    %c0_0 = arith.constant 0 : index
    %0 = vector.load %arg1[%c0, %c0_0] : memref<48x128xbf16, #tpu.memory_space<vmem>>, vector<48x128xbf16>
    %c0_1 = arith.constant 0 : index
    %c0_2 = arith.constant 0 : index
    %1 = vector.load %arg2[%c0_1, %c0_2] : memref<128x128xbf16, #tpu.memory_space<vmem>>, vector<128x128xbf16>
    %cst = arith.constant dense<0.000000e+00> : vector<48x128xf32>
    %2 = tpu.matmul %0, %1, %cst {dimension_numbers = #tpu.dot_dimension_numbers<[1], [1], [0], [0], [0, 0, 1, 0], [], []>} : vector<48x128xbf16>, vector<128x128xbf16>, vector<48x128xf32> -> vector<48x128xf32>
    %3 = tpu.iota {dimensions = array<i32: 0>} : vector<48x128xi32>
    %c32_i32 = arith.constant 32 : i32
    %4 = vector.broadcast %c32_i32 : i32 to vector<48x128xi32>
    %5 = arith.cmpi eq, %3, %4 : vector<48x128xi32>
    %cst_3 = arith.constant 1.000000e+00 : f32
    %6 = vector.broadcast %cst_3 : f32 to vector<48x128xf32>
    %7 = arith.select %5, %6, %2 : vector<48x128xi1>, vector<48x128xf32>
    %8 = arith.truncf %7 : vector<48x128xf32> to vector<48x128xbf16>
    %c0_4 = arith.constant 0 : index
    %c0_5 = arith.constant 0 : index
    %9 = vector.load %arg3[%c0_4, %c0_5] : memref<48x128xbf16, #tpu.memory_space<vmem>>, vector<48x128xbf16>
    tpu.vector_store %arg3[%c0_4, %c0_5], %8 {strides = array<i32>} : memref<48x128xbf16, #tpu.memory_space<vmem>>, vector<48x128xbf16>,
    return
  }
  func.func @transform_0(%arg0: i32) -> (i32, i32) {
    %c0_i32 = arith.constant 0 : i32
    %c0_i32_0 = arith.constant 0 : i32
    %c0_i32_1 = arith.constant 0 : i32
    return %c0_i32, %c0_i32_0 : i32, i32
  }
  func.func @transform_1(%arg0: i32) -> (i32, i32) {
    %c0_i32 = arith.constant 0 : i32
    %c0_i32_0 = arith.constant 0 : i32
    return %arg0, %c0_i32 : i32, i32
  }
  func.func @transform_2(%arg0: i32) -> (i32, i32) {
    %c0_i32 = arith.constant 0 : i32
    %c0_i32_0 = arith.constant 0 : i32
    return %c0_i32, %arg0 : i32, i32
  }
}

</mosaic_0001>

<bundles_post_ra>
// kernel: tpu_custom_call.1
= control target key start
LH: loop header
LB: loop body
LE: loop exit
PB: predicated region body
PF: predicated region fallthrough
CT: control target
= control target key end

     0   :  { %7 = vsyncpa [#allocation3], 0  ;;  %s416_s0 = inlined_call_operand.hbm [shape: bf16[48,128], index: 0, kind: input, shape index: {}]   ;;  %s417_s1 = inlined_call_operand.hbm [shape: bf16[128,128], index: 1, kind: input, shape index: {}]   ;;  %s418_s2 = inlined_call_operand.hbm [shape: bf16[48,128], index: 2, kind: output, shape index: {}]  }
   0x1   :  { %8 = vsyncpa [#allocation6], 0 }
   0x2   :  { %9 = vsyncpa [#allocation4], 0  ;;  %s14_s11 = sshll.u32 %s416_s0, 4  ;;  %s378_s12 = smov [#allocation2]   ;;  %s15_s11 = int_to_ptr.hbm [resolvable:$true] %s14_s11 }
   0x3   :  { %s16_s13 = sshll.u32 %s378_s12, 4  ;;  %s27_s16 = sshll.u32 %s417_s1, 4  ;;  %s17_s13 = int_to_ptr.vmem [resolvable:$true] %s16_s13  ;;  %s28_s16 = int_to_ptr.hbm [resolvable:$true] %s27_s16 }
   0x4   :  { %s379_s17 = smov 64   ;;  %s380_s18 = smov 4  }
   0x5   :  { %22 = dma.hbm_to_vmem [thread:$0]  %s15_s11, 384, %s17_s13, [#allocation3], %s379_s17, %s379_s17, %s380_s18  }
   0x6   :  { %s381_s19 = smov [#allocation5]  }
   0x7   :  { %s29_s20 = sshll.u32 %s381_s19, 4  ;;  %s30_s20 = int_to_ptr.vmem [resolvable:$true] %s29_s20 }
   0x8   :  { %35 = dma.hbm_to_vmem [thread:$0]  %s28_s16, 1024, %s30_s20, [#allocation6], %s379_s17, %s379_s17, %s380_s18  }
   0x9   :  { %372 = dma.done.wait [#allocation3], 384  }
   0xa   :  { %373 = vsyncadd [#allocation3], 4294966912 }
   0xb   :  { %374 = dma.done.wait [#allocation6], 1024  }
   0xc   :  { %375 = vsyncadd [#allocation6], 4294966272  ;;  %v261_v0 = vld [vmem:[#allocation5 + $0x38] sm:$0xff]  ;;  %v260_v1 = vld [vmem:[#allocation5 + $0x30] sm:$0xff]  ;;  %v156_v13 = vlaneseq  ;;  %s382_s0 = smov [#allocation7]   ;;  %s193_s23 = sshll.u32 %s418_s2, 4  ;;  %s194_s23 = int_to_ptr.hbm [resolvable:$true] %s193_s23 }
   0xd   :  { %132 = vmatpush.bf16.xpose.msra.mxu0 %v261_v0  ;;  %279 = vmatpush.bf16.xpose.msra.mxu1 %v261_v0  ;;  %v259_v2 = vld [vmem:[#allocation5 + $0x28] sm:$0xff]  ;;  %v258_v3 = vld [vmem:[#allocation5 + $0x20] sm:$0xff]  ;;  %v257_v4 = vld [vmem:[#allocation5 + $0x18] sm:$0xff]  ;;  %s191_s1 = sshll.u32 %s382_s0, 4  ;;  %s192_s1 = int_to_ptr.vmem [resolvable:$true] %s191_s1 }
   0xe   :  { %280 = vmatpush.bf16.xpose.msra.mxu2 %v261_v0  ;;  %v256_v5 = vld [vmem:[#allocation5 + $0x10] sm:$0xff]  ;;  %v255_v6 = vld [vmem:[#allocation5 + $0x8] sm:$0xff]  ;;  %v254_v7 = vld [vmem:[#allocation5] sm:$0xff]  ;;  %v157_v14 = vshrl.u32 %v156_v13, 7 }
   0xf   :  { %v251_v8 = vld [vmem:[#allocation2] sm:$0xff]  ;;  %v252_v9 = vld [vmem:[#allocation2 + $0x8] sm:$0xff]  ;;  %v253_v10 = vld [vmem:[#allocation2 + $0x10] sm:$0xff] }
  0x10   :  { %v161_v16 = vadd.s32 32, %v157_v14 }
  0x12   :  { %vm167_vm0 = vcmp.eq.s32.totalorder %v161_v16, 32 }
  0x15   :  { %133 = vmatpush.bf16.xpose.msra.mxu0 %v260_v1  ;;  %281 = vmatpush.bf16.xpose.msra.mxu1 %v260_v1 }
  0x16   :  { %282 = vmatpush.bf16.xpose.msra.mxu2 %v260_v1 }
  0x1d   :  { %134 = vmatpush.bf16.xpose.msra.mxu0 %v259_v2  ;;  %283 = vmatpush.bf16.xpose.msra.mxu1 %v259_v2 }
  0x1e   :  { %284 = vmatpush.bf16.xpose.msra.mxu2 %v259_v2 }
  0x25   :  { %135 = vmatpush.bf16.xpose.msra.mxu0 %v258_v3  ;;  %285 = vmatpush.bf16.xpose.msra.mxu1 %v258_v3 }
  0x26   :  { %286 = vmatpush.bf16.xpose.msra.mxu2 %v258_v3 }
  0x2d   :  { %136 = vmatpush.bf16.xpose.msra.mxu0 %v257_v4  ;;  %287 = vmatpush.bf16.xpose.msra.mxu1 %v257_v4 }
  0x2e   :  { %288 = vmatpush.bf16.xpose.msra.mxu2 %v257_v4 }
  0x35   :  { %137 = vmatpush.bf16.xpose.msra.mxu0 %v256_v5  ;;  %289 = vmatpush.bf16.xpose.msra.mxu1 %v256_v5 }
  0x36   :  { %290 = vmatpush.bf16.xpose.msra.mxu2 %v256_v5 }
  0x3d   :  { %138 = vmatpush.bf16.xpose.msra.mxu0 %v255_v6  ;;  %291 = vmatpush.bf16.xpose.msra.mxu1 %v255_v6 }
  0x3e   :  { %292 = vmatpush.bf16.xpose.msra.mxu2 %v255_v6 }
  0x45   :  { %139 = vmatpush.bf16.xpose.msra.mxu0 %v254_v7  ;;  %293 = vmatpush.bf16.xpose.msra.mxu1 %v254_v7 }
  0x46   :  { %294 = vmatpush.bf16.xpose.msra.mxu2 %v254_v7 }
  0x4c   :  { %140 = vmatmul.bf16.vlgmr.msra.gmra.mxu0 %v251_v8  ;;  %145 = vmatmul.bf16.vlgmr.msra.gmra.mxu1 %v252_v9 }
  0x4d   :  { %150 = vmatmul.bf16.vlgmr.msra.gmra.mxu2 %v253_v10 }
  0xc9   :  { %v141_v11 = vpop.f32.mrf.mxu0  ;;  %v146_v12 = vpop.f32.mrf.mxu1 }
  0xd0   :  { %v151_v15 = vpop.f32.mrf.mxu2 }
  0xd1   :  { %v143_v17 = vpop.f32.mrf.mxu0  ;;  %v148_v18 = vpop.f32.mrf.mxu1  ;;  %v173_v21 = vsel %vm167_vm0, 1.0, %v151_v15 }
  0xd2   :  { %v265_v19 = vpack.c.bf16 %v143_v17, %v141_v11  ;;  %v270_v20 = vpack.c.bf16 %v148_v18, %v146_v12 }
  0xd4   :  { %266 = vst [vmem:[#allocation7] sm:$0xff] %v265_v19  }
  0xd5   :  { %277 = vst [vmem:[#allocation7 + $0x8] sm:$0xff] %v270_v20  }
  0xd8   :  { %v153_v22 = vpop.f32.mrf.mxu2 }
  0xd9   :  { %v275_v23 = vpack.c.bf16 %v153_v22, %v173_v21 }
  0xdb   :  { %278 = vst [vmem:[#allocation7 + $0x10] sm:$0xff] %v275_v23  }
  0xdc   :  { %199 = dma.vmem_to_hbm [thread:$0]  %s192_s1, 384, %s194_s23, [#allocation4], %s379_s17, %s379_s17, %s380_s18  }
  0xdd   :  { %376 = dma.done.wait [#allocation4], 384  }
  0xde   :  { %377 = vsyncadd [#allocation4], 4294966912 }
  0xdf   :  { %204 = vsyncpa [#allocation3], 1 }
  0xe0   :  { %205 = vsyncpa [#allocation6], 1 }
  0xe1   :  { %206 = vsyncpa [#allocation4], 1 }

</bundles_post_ra>
